<compile_context>
chip_gen: v7x
topology: tpu7x:2x2x1
jax: 0.10.0
libtpu: 0.0.40
codegen_flags: <defaults>
</compile_context>

<pallas_src>
import numpy as np
import jax
import jax.numpy as jnp
from jax.experimental import pallas as pl
from jax.experimental.pallas import tpu as pltpu

NEG_SLOPE = 0.2   # LeakyReLU(0.2) in the GINConv MLPs
BN_EPS = 1e-5     # nn.BatchNorm1d default eps
LANE = 128        # TPU lane width; final output padded to this for dense stores


def _leaky(x):
    return jnp.where(x > 0, x, NEG_SLOPE * x)


# ----------------------------- fused Pallas kernel ---------------------------

def gin_fused_kernel(s_ref, x_ref, p_ref, w_ref, b_ref, fcw_ref, fcb_ref, o_ref):
    """Entire GIN forward in one kernel; intermediates never leave VMEM.

    Per layer (GINConv, eps=0):  h <- nn(S @ h)  with
      nn = Linear -> LeakyReLU(0.2) -> BatchNorm1d(eval, folded into W2)
           -> Linear -> LeakyReLU(0.2)
    then global_add_pool (P @ h) -> BatchNorm1d (eval, folded into fc) -> fc.
    Weight slab layout (lane axis): [W1_0 | W2_0' | W1_1 | W2_1' | ...],
    bias slab: [b1_0 | b2_0 | b1_1 | b2_1 | ...].
    """
    N, F = x_ref.shape
    H = w_ref.shape[0]
    n_layers = w_ref.shape[1] // (2 * H)

    s = s_ref[...]

    # Embed raw [N, F] node features into the uniform H-wide activation slab
    # (extra columns are zero; layer-0 W1 rows beyond F are zero in the slab).
    h = x_ref[...]
    if F < H:
        h = jnp.concatenate([h, jnp.zeros((N, H - F), jnp.float32)], axis=-1)

    for l in range(n_layers):                      # static python loop -> static slices
        c1 = 2 * l * H
        c2 = c1 + H
        # aggregation: (1 + eps) * x_i + sum_{j in N(i)} x_j  ==  S @ h (eps=0)
        agg = jnp.dot(s, h, preferred_element_type=jnp.float32)
        t = jnp.dot(agg, w_ref[:, c1:c1 + H],
                    preferred_element_type=jnp.float32) + b_ref[:, c1:c1 + H]
        t = _leaky(t)
        # BatchNorm1d (eval) is folded into the W2 slab columns at packing time
        t = jnp.dot(t, w_ref[:, c2:c2 + H],
                    preferred_element_type=jnp.float32) + b_ref[:, c2:c2 + H]
        h = _leaky(t)
        # F.dropout(x, p, training=False) -> identity

    pooled = jnp.dot(p_ref[...], h, preferred_element_type=jnp.float32)  # global_add_pool
    # self.bn (eval) folded into fc weights; lane-dense padded [B, 128] store
    o_ref[...] = (jnp.dot(pooled, fcw_ref[...],
                          preferred_element_type=jnp.float32) + fcb_ref[...])


# ------------------------------ parameters -----------------------------------

def init_params(key, input_dim, hidden_dim, latent_dim, n_layers):
    """Random module parameters, plus packed lane-dense slabs for the kernel."""
    def lin(k, din, dout):
        kw, kb = jax.random.split(k)
        w = jax.random.normal(kw, (din, dout), jnp.float32) * 0.1
        b = jax.random.normal(kb, (dout,), jnp.float32) * 0.01
        return np.asarray(w), np.asarray(b)

    H = hidden_dim
    keys = jax.random.split(key, 2 * n_layers + 1)

    # BatchNorm1d eval-mode fold with default stats/affine (gamma=1, beta=0,
    # running_mean=0, running_var=1)  ->  scale = 1/sqrt(1+eps), shift = 0.
    bn_scale_val = np.float32(1.0 / np.sqrt(1.0 + BN_EPS))

    raw = {"convs": []}
    w_slab = np.zeros((H, 2 * n_layers * H), np.float32)   # [32, 128] lane-dense
    b_slab = np.zeros((1, 2 * n_layers * H), np.float32)   # [1, 128]
    din = input_dim
    for l in range(n_layers):
        w1, b1 = lin(keys[2 * l], din, H)
        w2, b2 = lin(keys[2 * l + 1], H, H)
        raw["convs"].append((w1, b1, w2, b2))
        c1 = 2 * l * H
        c2 = c1 + H
        w_slab[:din, c1:c1 + H] = w1              # layer-0 rows beyond F stay zero
        b_slab[0, c1:c1 + H] = b1
        w_slab[:, c2:c2 + H] = bn_scale_val * w2  # in-conv BN (eval) folded here
        b_slab[0, c2:c2 + H] = b2
        din = H

    fc_w, fc_b = lin(keys[-1], H, latent_dim)
    raw["fc"] = (fc_w, fc_b)

    # pad fc output to a full 128-lane slab (lane-dense final store) and fold
    # the post-pool BatchNorm1d (eval) scale into it.
    L_pad = ((latent_dim + LANE - 1) // LANE) * LANE
    fc_w_pad = np.zeros((H, L_pad), np.float32)
    fc_b_pad = np.zeros((1, L_pad), np.float32)
    fc_w_pad[:, :latent_dim] = bn_scale_val * fc_w
    fc_b_pad[0, :latent_dim] = fc_b

    packed = dict(
        w_slab=jnp.asarray(w_slab),
        b_slab=jnp.asarray(b_slab),
        fc_w=jnp.asarray(fc_w_pad),
        fc_b=jnp.asarray(fc_b_pad),
        latent_dim=latent_dim,
    )
    return packed, raw, bn_scale_val


# -------------------------------- forward ------------------------------------

def gin_forward(packed, x, S, P):
    """x:[N,F] node features, S:[N,N] = A_in + I, P:[B,N] pooling matrix.

    Returns the 128-lane padded output [B, L_pad]; columns [:latent_dim] hold
    the GIN embedding (keep padded downstream when possible to avoid an extra
    XLA slice op around the fused kernel).
    """
    B = P.shape[0]
    L_pad = packed["fc_w"].shape[1]

    args = (S, x, P, packed["w_slab"], packed["b_slab"],
            packed["fc_w"], packed["fc_b"])

    return pl.pallas_call(
        gin_fused_kernel,
        out_shape=jax.ShapeDtypeStruct((B, L_pad), jnp.float32),
        in_specs=[pl.BlockSpec(memory_space=pltpu.MemorySpace.VMEM)] * len(args),
        out_specs=pl.BlockSpec(memory_space=pltpu.MemorySpace.VMEM),
    )(*args)


# ------------------------- pure-numpy reference -------------------------------

def gin_forward_ref(raw, bn_scale_val, x, S, P):
    h = np.asarray(x, np.float32)
    Sn = np.asarray(S, np.float32)
    Pn = np.asarray(P, np.float32)
    for (w1, b1, w2, b2) in raw["convs"]:
        agg = Sn @ h
        t = agg @ w1 + b1
        t = np.where(t > 0, t, NEG_SLOPE * t)
        t = t * bn_scale_val                         # BN eval fold (shift = 0)
        t = t @ w2 + b2
        h = np.where(t > 0, t, NEG_SLOPE * t)
    pooled = Pn @ h
    normed = pooled * bn_scale_val
    fc_w, fc_b = raw["fc"]
    return normed @ fc_w + fc_b


# --------------------------------- main ---------------------------------------

if __name__ == "__main__":
    # Small, module-consistent shapes.
    input_dim = 4
    hidden_dim = 32
    latent_dim = 16
    n_layers = 2
    n_max_nodes = 8
    B = 2                      # two graphs in the batch
    N = B * n_max_nodes        # total nodes

    key = jax.random.PRNGKey(0)
    k_par, k_x = jax.random.split(key, 2)

    packed, raw, bn_scale_val = init_params(
        k_par, input_dim, hidden_dim, latent_dim, n_layers)

    # data.x : node features
    x = jax.random.normal(k_x, (N, input_dim), jnp.float32)

    # data.edge_index : bidirectional ring inside each graph
    src, dst = [], []
    for g in range(B):
        off = g * n_max_nodes
        for i in range(n_max_nodes):
            j = (i + 1) % n_max_nodes
            src += [off + i, off + j]
            dst += [off + j, off + i]
    edge_index = np.array([src, dst], np.int32)   # [2, E]

    # Dense incoming-edge adjacency:  A_in[dst, src] += 1 ; S = A_in + I (eps=0)
    A_in = jnp.zeros((N, N), jnp.float32).at[edge_index[1], edge_index[0]].add(1.0)
    S = A_in + jnp.eye(N, dtype=jnp.float32)

    # data.batch -> global_add_pool selection matrix P [B, N]
    batch = np.repeat(np.arange(B), n_max_nodes)
    P = jnp.asarray((batch[None, :] == np.arange(B)[:, None]).astype(np.float32))

    out = gin_forward(packed, x, S, P)
    out = jax.block_until_ready(out)
    out_np = np.asarray(out)

    # Correctness against a pure-numpy f32 reference of the same eval-mode math.
    # Tolerance bounded by MXU f32 matmuls at default precision (bf16 passes).
    ref = gin_forward_ref(raw, bn_scale_val, x, S, P)
    assert out_np.shape == (B, packed["fc_w"].shape[1])
    np.testing.assert_allclose(out_np[:, :latent_dim], ref, rtol=5e-3, atol=5e-3)

    print("KERNEL_OK")
</pallas_src>

<mosaic_0001>
module attributes {stable_mosaic.version = 11 : i64} {
  func.func @gin_fused_kernel(%arg0: memref<16x16xf32, #tpu.memory_space<vmem>>, %arg1: memref<16x4xf32, #tpu.memory_space<vmem>>, %arg2: memref<2x16xf32, #tpu.memory_space<vmem>>, %arg3: memref<32x128xf32, #tpu.memory_space<vmem>>, %arg4: memref<1x128xf32, #tpu.memory_space<vmem>>, %arg5: memref<32x128xf32, #tpu.memory_space<vmem>>, %arg6: memref<1x128xf32, #tpu.memory_space<vmem>>, %arg7: memref<2x128xf32, #tpu.memory_space<vmem>>) attributes {dimension_semantics = [], scalar_prefetch = 0 : i64, scratch_operands = 0 : i64, tpu.core_type = #tpu.core_type<tc>} {
    %c0 = arith.constant 0 : index
    %c0_0 = arith.constant 0 : index
    %0 = vector.load %arg0[%c0, %c0_0] : memref<16x16xf32, #tpu.memory_space<vmem>>, vector<16x16xf32>
    %c0_1 = arith.constant 0 : index
    %c0_2 = arith.constant 0 : index
    %1 = vector.load %arg1[%c0_1, %c0_2] : memref<16x4xf32, #tpu.memory_space<vmem>>, vector<16x4xf32>
    %cst = arith.constant 0.000000e+00 : f32
    %2 = vector.broadcast %cst : f32 to vector<16x28xf32>
    %3 = tpu.concatenate %1, %2 in 1 : vector<16x4xf32>, vector<16x28xf32> -> vector<16x32xf32>
    %cst_3 = arith.constant dense<0.000000e+00> : vector<16x32xf32>
    %4 = tpu.matmul %0, %3, %cst_3 {dimension_numbers = #tpu.dot_dimension_numbers<[1], [0], [0], [1], [0, 0, 1, 1], [], []>} : vector<16x16xf32>, vector<16x32xf32>, vector<16x32xf32> -> vector<16x32xf32>
    %c0_4 = arith.constant 0 : index
    %c0_5 = arith.constant 0 : index
    %5 = vector.load %arg3[%c0_4, %c0_5] : memref<32x128xf32, #tpu.memory_space<vmem>>, vector<32x32xf32>
    %cst_6 = arith.constant dense<0.000000e+00> : vector<16x32xf32>
    %6 = tpu.matmul %4, %5, %cst_6 {dimension_numbers = #tpu.dot_dimension_numbers<[1], [0], [0], [1], [0, 0, 1, 1], [], []>} : vector<16x32xf32>, vector<32x32xf32>, vector<16x32xf32> -> vector<16x32xf32>
    %c0_7 = arith.constant 0 : index
    %c0_8 = arith.constant 0 : index
    %7 = vector.load %arg4[%c0_7, %c0_8] : memref<1x128xf32, #tpu.memory_space<vmem>>, vector<1x32xf32>
    %8 = vector.broadcast %7 : vector<1x32xf32> to vector<16x32xf32>
    %9 = arith.addf %6, %8 : vector<16x32xf32>
    %cst_9 = arith.constant 0.000000e+00 : f32
    %10 = vector.broadcast %cst_9 : f32 to vector<16x32xf32>
    %11 = arith.cmpf ogt, %9, %10 : vector<16x32xf32>
    %cst_10 = arith.constant 2.000000e-01 : f32
    %12 = vector.broadcast %cst_10 : f32 to vector<16x32xf32>
    %13 = arith.mulf %12, %9 : vector<16x32xf32>
    %14 = arith.select %11, %9, %13 : vector<16x32xi1>, vector<16x32xf32>
    %c0_11 = arith.constant 0 : index
    %c32 = arith.constant 32 : index
    %15 = vector.load %arg3[%c0_11, %c32] : memref<32x128xf32, #tpu.memory_space<vmem>>, vector<32x32xf32>
    %cst_12 = arith.constant dense<0.000000e+00> : vector<16x32xf32>
    %16 = tpu.matmul %14, %15, %cst_12 {dimension_numbers = #tpu.dot_dimension_numbers<[1], [0], [0], [1], [0, 0, 1, 1], [], []>} : vector<16x32xf32>, vector<32x32xf32>, vector<16x32xf32> -> vector<16x32xf32>
    %c0_13 = arith.constant 0 : index
    %c32_14 = arith.constant 32 : index
    %17 = vector.load %arg4[%c0_13, %c32_14] : memref<1x128xf32, #tpu.memory_space<vmem>>, vector<1x32xf32>
    %18 = vector.broadcast %17 : vector<1x32xf32> to vector<16x32xf32>
    %19 = arith.addf %16, %18 : vector<16x32xf32>
    %cst_15 = arith.constant 0.000000e+00 : f32
    %20 = vector.broadcast %cst_15 : f32 to vector<16x32xf32>
    %21 = arith.cmpf ogt, %19, %20 : vector<16x32xf32>
    %cst_16 = arith.constant 2.000000e-01 : f32
    %22 = vector.broadcast %cst_16 : f32 to vector<16x32xf32>
    %23 = arith.mulf %22, %19 : vector<16x32xf32>
    %24 = arith.select %21, %19, %23 : vector<16x32xi1>, vector<16x32xf32>
    %cst_17 = arith.constant dense<0.000000e+00> : vector<16x32xf32>
    %25 = tpu.matmul %0, %24, %cst_17 {dimension_numbers = #tpu.dot_dimension_numbers<[1], [0], [0], [1], [0, 0, 1, 1], [], []>} : vector<16x16xf32>, vector<16x32xf32>, vector<16x32xf32> -> vector<16x32xf32>
    %c0_18 = arith.constant 0 : index
    %c64 = arith.constant 64 : index
    %26 = vector.load %arg3[%c0_18, %c64] : memref<32x128xf32, #tpu.memory_space<vmem>>, vector<32x32xf32>
    %cst_19 = arith.constant dense<0.000000e+00> : vector<16x32xf32>
    %27 = tpu.matmul %25, %26, %cst_19 {dimension_numbers = #tpu.dot_dimension_numbers<[1], [0], [0], [1], [0, 0, 1, 1], [], []>} : vector<16x32xf32>, vector<32x32xf32>, vector<16x32xf32> -> vector<16x32xf32>
    %c0_20 = arith.constant 0 : index
    %c64_21 = arith.constant 64 : index
    %28 = vector.load %arg4[%c0_20, %c64_21] : memref<1x128xf32, #tpu.memory_space<vmem>>, vector<1x32xf32>
    %29 = vector.broadcast %28 : vector<1x32xf32> to vector<16x32xf32>
    %30 = arith.addf %27, %29 : vector<16x32xf32>
    %cst_22 = arith.constant 0.000000e+00 : f32
    %31 = vector.broadcast %cst_22 : f32 to vector<16x32xf32>
    %32 = arith.cmpf ogt, %30, %31 : vector<16x32xf32>
    %cst_23 = arith.constant 2.000000e-01 : f32
    %33 = vector.broadcast %cst_23 : f32 to vector<16x32xf32>
    %34 = arith.mulf %33, %30 : vector<16x32xf32>
    %35 = arith.select %32, %30, %34 : vector<16x32xi1>, vector<16x32xf32>
    %c0_24 = arith.constant 0 : index
    %c96 = arith.constant 96 : index
    %36 = vector.load %arg3[%c0_24, %c96] : memref<32x128xf32, #tpu.memory_space<vmem>>, vector<32x32xf32>
    %cst_25 = arith.constant dense<0.000000e+00> : vector<16x32xf32>
    %37 = tpu.matmul %35, %36, %cst_25 {dimension_numbers = #tpu.dot_dimension_numbers<[1], [0], [0], [1], [0, 0, 1, 1], [], []>} : vector<16x32xf32>, vector<32x32xf32>, vector<16x32xf32> -> vector<16x32xf32>
    %c0_26 = arith.constant 0 : index
    %c96_27 = arith.constant 96 : index
    %38 = vector.load %arg4[%c0_26, %c96_27] : memref<1x128xf32, #tpu.memory_space<vmem>>, vector<1x32xf32>
    %39 = vector.broadcast %38 : vector<1x32xf32> to vector<16x32xf32>
    %40 = arith.addf %37, %39 : vector<16x32xf32>
    %cst_28 = arith.constant 0.000000e+00 : f32
    %41 = vector.broadcast %cst_28 : f32 to vector<16x32xf32>
    %42 = arith.cmpf ogt, %40, %41 : vector<16x32xf32>
    %cst_29 = arith.constant 2.000000e-01 : f32
    %43 = vector.broadcast %cst_29 : f32 to vector<16x32xf32>
    %44 = arith.mulf %43, %40 : vector<16x32xf32>
    %45 = arith.select %42, %40, %44 : vector<16x32xi1>, vector<16x32xf32>
    %c0_30 = arith.constant 0 : index
    %c0_31 = arith.constant 0 : index
    %46 = vector.load %arg2[%c0_30, %c0_31] : memref<2x16xf32, #tpu.memory_space<vmem>>, vector<2x16xf32>
    %cst_32 = arith.constant dense<0.000000e+00> : vector<2x32xf32>
    %47 = tpu.matmul %46, %45, %cst_32 {dimension_numbers = #tpu.dot_dimension_numbers<[1], [0], [0], [1], [0, 0, 1, 1], [], []>} : vector<2x16xf32>, vector<16x32xf32>, vector<2x32xf32> -> vector<2x32xf32>
    %c0_33 = arith.constant 0 : index
    %c0_34 = arith.constant 0 : index
    %48 = vector.load %arg5[%c0_33, %c0_34] : memref<32x128xf32, #tpu.memory_space<vmem>>, vector<32x128xf32>
    %cst_35 = arith.constant dense<0.000000e+00> : vector<2x128xf32>
    %49 = tpu.matmul %47, %48, %cst_35 {dimension_numbers = #tpu.dot_dimension_numbers<[1], [0], [0], [1], [0, 0, 1, 1], [], []>} : vector<2x32xf32>, vector<32x128xf32>, vector<2x128xf32> -> vector<2x128xf32>
    %c0_36 = arith.constant 0 : index
    %c0_37 = arith.constant 0 : index
    %50 = vector.load %arg6[%c0_36, %c0_37] : memref<1x128xf32, #tpu.memory_space<vmem>>, vector<1x128xf32>
    %51 = vector.broadcast %50 : vector<1x128xf32> to vector<2x128xf32>
    %52 = arith.addf %49, %51 : vector<2x128xf32>
    %c0_38 = arith.constant 0 : index
    %c0_39 = arith.constant 0 : index
    %53 = vector.load %arg7[%c0_38, %c0_39] : memref<2x128xf32, #tpu.memory_space<vmem>>, vector<2x128xf32>
    tpu.vector_store %arg7[%c0_38, %c0_39], %52 {strides = array<i32>} : memref<2x128xf32, #tpu.memory_space<vmem>>, vector<2x128xf32>,
    return
  }
}

</mosaic_0001>

<bundles_post_ra>
// kernel: tpu_custom_call.1
= control target key start
LH: loop header
LB: loop body
LE: loop exit
PB: predicated region body
PF: predicated region fallthrough
CT: control target
= control target key end

     0   :  { %12 = vsyncpa [#allocation3], 0  ;;  %s1243_s0 = inlined_call_operand.hbm [shape: f32[16,16], index: 0, kind: input, shape index: {}]   ;;  %s1244_s1 = inlined_call_operand.vmem [shape: f32[16,4], index: 1, kind: input, shape index: {}]   ;;  %s1245_s2 = inlined_call_operand.vmem [shape: f32[2,16], index: 2, kind: input, shape index: {}]   ;;  %s1246_s3 = inlined_call_operand.hbm [shape: f32[32,128], index: 3, kind: input, shape index: {}]   ;;  %s1247_s4 = inlined_call_operand.vmem [shape: f32[1,128], index: 4, kind: input, shape index: {}]   ;;  %s1248_s5 = inlined_call_operand.vmem [shape: f32[32,128], index: 5, kind: input, shape index: {}]   ;;  %s1249_s6 = inlined_call_operand.vmem [shape: f32[1,128], index: 6, kind: input, shape index: {}]   ;;  %s1250_s7 = inlined_call_operand.hbm [shape: f32[2,128], index: 7, kind: output, shape index: {}]  }
   0x1   :  { %13 = vsyncpa [#allocation6], 0 }
   0x2   :  { %14 = vsyncpa [#allocation4], 0  ;;  %s1101_s24 = smov [#allocation2]   ;;  %s1029_s28 = scalar_lea.hbm %s1243_s0, 256 }
   0x3   :  { %s20_s25 = sshll.u32 %s1101_s24, 4  ;;  %p1030_p0 = scmp.ne.s32.totalorder %s1243_s0, %s1029_s28  ;;  %s21_s25 = int_to_ptr.vmem [resolvable:$true] %s20_s25 }
   0x4   :  { %p1033_p1 = scmp.lt.u32.totalorder %s1029_s28, %s1243_s0 }
   0x6   :  { %p1035_p2 = pnand %p1033_p1, %p1030_p0 }
   0x8   :  { %1038 = shalt.err (!%p1035_p2)
}
   0x9   :  { %s1039_s10 = scalar_lea.vmem %s21_s25, 256  ;;  %p1044_p4 = scmp.lt.s32.totalorder %s21_s25, %s21_s25 }
   0xa   :  { %p1040_p3 = scmp.ne.s32.totalorder %s21_s25, %s1039_s10  ;;  %p1045_p5 = scmp.lt.s32.totalorder %s1039_s10, %s1039_s10 }
   0xc   :  { %p1046_p6 = por %p1045_p5, %p1044_p4 }
   0xe   :  { %p1047_p7 = pnand %p1046_p6, %p1040_p3 }
  0x10   :  { %1050 = shalt.err (!%p1047_p7)
}
  0x11   :  { %s1102_s11 = smov 128   ;;  %s1103_s12 = smov 8  }
  0x12   :  { %26 = dma.hbm_to_vmem [thread:$0]  %s1243_s0, 256, %s21_s25, [#allocation3], %s1102_s11, %s1102_s11, %s1103_s12  }
  0x13   :  { %s1104_s15 = smov [#allocation5]   ;;  %s1051_s19 = scalar_lea.hbm %s1246_s3, 512 }
  0x14   :  { %s36_s16 = sshll.u32 %s1104_s15, 4  ;;  %p1052_p8 = scmp.ne.s32.totalorder %s1246_s3, %s1051_s19  ;;  %s37_s16 = int_to_ptr.vmem [resolvable:$true] %s36_s16 }
  0x15   :  { %p1055_p9 = scmp.lt.u32.totalorder %s1051_s19, %s1246_s3 }
  0x17   :  { %p1057_p10 = pnand %p1055_p9, %p1052_p8 }
  0x19   :  { %1060 = shalt.err (!%p1057_p10)
}
  0x1a   :  { %s1061_s24 = scalar_lea.vmem %s37_s16, 512  ;;  %p1066_p12 = scmp.lt.s32.totalorder %s37_s16, %s37_s16 }
  0x1b   :  { %p1062_p11 = scmp.ne.s32.totalorder %s37_s16, %s1061_s24  ;;  %p1067_p13 = scmp.lt.s32.totalorder %s1061_s24, %s1061_s24 }
  0x1d   :  { %p1068_p0 = por %p1067_p13, %p1066_p12 }
  0x1f   :  { %p1069_p1 = pnand %p1068_p0, %p1062_p11 }
  0x21   :  { %1072 = shalt.err (!%p1069_p1)
}
  0x22   :  { %42 = dma.hbm_to_vmem [thread:$0]  %s1246_s3, 512, %s37_s16, [#allocation6], %s1102_s11, %s1102_s11, %s1103_s12  }
  0x23   :  { %1095 = dma.done.wait [#allocation3], 256  }
  0x24   :  { %1096 = vsyncadd [#allocation3], 4294967040 }
  0x25   :  { %1097 = dma.done.wait [#allocation6], 512  }
  0x26   :  { %1098 = vsyncadd [#allocation6], 4294966784  ;;  %vm59_vm0 = vcmask 31744   ;;  %vm62_vm1 = vcmask 130048   ;;  %v57_v0 = vld [vmem:[%s1244_s1] sm:$0xff]  ;;  %v58_v1 = vld [vmem:[%s1244_s1 + $0x8] sm:$0xff] }
  0x27   :  { %vm938_vm2 = vmpackc.low %vm59_vm0, %vm59_vm0  ;;  %v55_v2 = vld [vmem:[#allocation2] sm:$0xff]  ;;  %v937_v3 = vpack.c.bf16 %v58_v1, %v57_v0  ;;  %v144_v4 = vld [vmem:[#allocation5] sm:$0xff]  ;;  %s1105_s1 = smov 96   ;;  %vm155_vm3 = vcmask 261120   ;;  %s1106_s8 = smov 64   ;;  %vm1109_vm10 = vmmov 0  }
  0x28   :  { %865 = vmatprep.mubr.msk.f32.mxu0 %vm62_vm1, %v55_v2  ;;  %v145_v5 = vld [vmem:[#allocation5 + $0x8] sm:$0xff]  ;;  %v146_v7 = vld [vmem:[#allocation5 + $0x10] sm:$0xff]  ;;  %v147_v8 = vld [vmem:[#allocation5 + $0x18] sm:$0xff]  ;;  %s1111_s20 = smov [#allocation7]  }
  0x29   :  { %v943_v6 = vpack.c.bf16 %v145_v5, %v144_v4  ;;  %939 = vmatprep.subr.msk.bf16.mxu0 %vm938_vm2, %v937_v3  ;;  %v947_v9 = vpack.c.bf16 %v147_v8, %v146_v7  ;;  %v1183_v10 = vld [vmem:[#allocation2 + $0x8] sm:$0xff]  ;;  %v1187_v11 = vpack.i.bf16 %v145_v5, %v144_v4  ;;  %v1190_v12 = vpack.i.bf16 %v147_v8, %v146_v7  ;;  %v807_v23 = vld [vmem:[%s1247_s4] ss:$0 sm:$0xff]  ;;  %s1107_s4 = smov 32   ;;  %s793_s21 = sshll.u32 %s1111_s20, 4  ;;  %s794_s21 = int_to_ptr.vmem [resolvable:$true] %s793_s21 }
  0x2a   :  { %942 = vmatpush3.bf16.msk.msra.mxu0 %vm938_vm2, %v937_v3  ;;  %259 = vrot.lane.b32.xlu1 %v807_v23, %s1105_s1  ;;  %v1108_v5 = vmov 0.0|0.0   ;;  %v702_v7 = vld [vmem:[%s1248_s5] sm:$0xff]  ;;  %v703_v8 = vld [vmem:[%s1248_s5 + $0x8] sm:$0xff]  ;;  %s1073_s22 = scalar_lea.vmem %s794_s21, 32  ;;  %p1078_p3 = scmp.lt.s32.totalorder %s794_s21, %s794_s21 }
  0x2b   :  { %944 = vmatprep.subr.bf16.mxu1 %v943_v6  ;;  %1000 = vrot.lane.b32.xlu0 %v1187_v11, %s1105_s1  ;;  %p1074_p2 = scmp.ne.s32.totalorder %s794_s21, %s1073_s22  ;;  %p1079_p4 = scmp.lt.s32.totalorder %s1073_s22, %s1073_s22 }
  0x2c   :  { %946 = vmatpush3.bf16.msra.mxu1 %v943_v6  ;;  %v1110_v6 = vmov 0.0  }
  0x2d   :  { %948 = vmatprep.subr.bf16.mxu1 %v947_v9  ;;  %866 = vmatmul.mubr.msk.f32.vlgmr.msra.gmra.mrb[0].mxu0 %vm62_vm1, %v1183_v10  ;;  %p1080_p5 = por %p1079_p4, %p1078_p3 }
  0x2e   :  { %1010 = vrot.lane.b32.xlu1 %v1187_v11, %s1106_s8 }
  0x2f   :  { %1005 = vrot.lane.b32.xlu0 %v1190_v12, %s1105_s1  ;;  %p1081_p6 = pnand %p1080_p5, %p1074_p2 }
  0x30   :  { %950 = vmatpush3.bf16.msra.mxu1 %v947_v9  ;;  %v704_v9 = vld [vmem:[%s1248_s5 + $0x10] sm:$0xff] }
  0x32   :  { %1020 = vrot.lane.b32.xlu1 %v1187_v11, %s1107_s4  ;;  %v705_v11 = vld [vmem:[%s1248_s5 + $0x18] sm:$0xff] }
  0x33   :  { %1015 = vrot.lane.b32.xlu0 %v1190_v12, %s1106_s8 }
  0x36   :  { %1025 = vrot.lane.b32.xlu1 %v1190_v12, %s1107_s4  ;;  %v986_v12 = vpack.c.bf16 %v705_v11, %v704_v9 }
  0x37   :  { %436 = vrot.lane.b32.xlu0 %v807_v23, %s1106_s8 }
  0x3b   :  { %538 = vrot.lane.b32.xlu0 %v807_v23, %s1107_s4 }
  0x9c   :  { %v260_v32 = vpop.permute.xlu1 %259 }
  0x9d   :  { %v1001_v13 = vpop.permute.xlu0 %1000 }
  0x9e   :  { %v1003_v14 = vunpack.i.h.bf16 %v1001_v13  ;;  %v1002_v15 = vunpack.i.l.bf16 %v1001_v13 }
  0xa0   :  { %v951_v16 = vpack.c.bf16 %v1003_v14, %v1002_v15  ;;  %v1011_v36 = vpop.permute.xlu1 %1010 }
  0xa1   :  { %v1006_v17 = vpop.permute.xlu0 %1005  ;;  %v1013_v38 = vunpack.i.h.bf16 %v1011_v36  ;;  %v1012_v39 = vunpack.i.l.bf16 %v1011_v36 }
  0xa2   :  { %v1008_v18 = vunpack.i.h.bf16 %v1006_v17  ;;  %v1007_v19 = vunpack.i.l.bf16 %v1006_v17  ;;  %952 = vmatprep.subr.bf16.mxu0 %v951_v16 }
  0xa3   :  { %954 = vmatpush3.bf16.msra.mxu0 %v951_v16  ;;  %v963_v45 = vpack.c.bf16 %v1013_v38, %v1012_v39 }
  0xa4   :  { %v955_v20 = vpack.c.bf16 %v1008_v18, %v1007_v19  ;;  %v1021_v50 = vpop.permute.xlu1 %1020 }
  0xa5   :  { %v1016_v40 = vpop.permute.xlu0 %1015  ;;  %v1023_v51 = vunpack.i.h.bf16 %v1021_v50  ;;  %v1022_v52 = vunpack.i.l.bf16 %v1021_v50 }
  0xa6   :  { %956 = vmatprep.subr.bf16.mxu0 %v955_v20  ;;  %v1018_v42 = vunpack.i.h.bf16 %v1016_v40  ;;  %v1017_v43 = vunpack.i.l.bf16 %v1016_v40 }
  0xa7   :  { %958 = vmatpush3.bf16.msra.mxu0 %v955_v20  ;;  %v971_v53 = vpack.c.bf16 %v1023_v51, %v1022_v52 }
  0xa8   :  { %v967_v47 = vpack.c.bf16 %v1018_v42, %v1017_v43  ;;  %964 = vmatprep.subr.bf16.mxu0 %v963_v45  ;;  %v1026_v54 = vpop.permute.xlu1 %1025 }
  0xa9   :  { %v1028_v55 = vunpack.i.h.bf16 %v1026_v54  ;;  %v1027_v56 = vunpack.i.l.bf16 %v1026_v54  ;;  %v437_v60 = vpop.permute.xlu0 %436 }
  0xab   :  { %v975_v57 = vpack.c.bf16 %v1028_v55, %v1027_v56 }
  0xad   :  { %v539_v13 = vpop.permute.xlu0 %538 }
 0x100   :  { %v867_v21 = vpop.f32.mrb[0].mxu0 }
 0x101   :  { %v135_v22 = vpop.f32.mrb[1].mxu0 }
 0x102   :  { %876 = vmatprep.mubr.msk.f32.mxu1 %vm155_vm3, %v135_v22 }
 0x103   :  { %877 = vmatmul.mubr.msk.f32.vlgmr.msra.gmra.mrb[0].mxu1 %vm155_vm3, %v867_v21 }
 0x104   :  { %894 = vmatprep.mubr.msk.f32.mxu1 %vm62_vm1, %v55_v2 }
 0x1d6   :  { %v878_v24 = vpop.f32.mrb[0].mxu1 }
 0x1d7   :  { %v234_v25 = vadd.f32 %v878_v24, %v807_v23  ;;  %v228_v26 = vpop.f32.mrb[1].mxu1 }
 0x1d8   :  { %v229_v27 = vadd.f32 %v807_v23, %v228_v26  ;;  %v628_v23 = vld [vmem:[%s1245_s2] sm:$0x3] }
 0x1d9   :  { %v240_v28 = vmul.f32 0.2, %v234_v25  ;;  %vm238_vm4 = vcmp.gt.f32.partialorder %v234_v25, 0.0  ;;  %v819_v26 = vld [vmem:[%s1249_s6] ss:$0 sm:$0xff] }
 0x1da   :  { %vm237_vm5 = vcmp.gt.f32.partialorder %v229_v27, 0.0  ;;  %v239_v29 = vmul.f32 0.2, %v229_v27 }
 0x1db   :  { %v242_v31 = vsel %vm238_vm4, %v234_v25, %v240_v28 }
 0x1dc   :  { %v241_v30 = vsel %vm237_vm5, %v229_v27, %v239_v29 }
 0x1dd   :  { %887 = vmatprep.mubr.msk.f32.mxu0 %vm155_vm3, %v241_v30 }
 0x1de   :  { %888 = vmatmul.mubr.msk.f32.vlgmr.msra.gmra.mrb[2].mxu0 %vm155_vm3, %v242_v31 }
 0x1df   :  { %966 = vmatpush3.bf16.msra.mxu0 %v963_v45 }
 0x1e0   :  { %968 = vmatprep.subr.bf16.mxu0 %v967_v47 }
 0x1e3   :  { %970 = vmatpush3.bf16.msra.mxu0 %v967_v47 }
 0x1e4   :  { %979 = vmatprep.subr.bf16.mxu0 %v1108_v5 }
 0x2b1   :  { %v889_v33 = vpop.f32.mrb[2].mxu0 }
 0x2b2   :  { %v340_v34 = vadd.f32 %v889_v33, %v260_v32  ;;  %v334_v35 = vpop.f32.mrb[3].mxu0 }
 0x2b3   :  { %v335_v37 = vadd.f32 %v334_v35, %v260_v32 }
 0x2b4   :  { %vm344_vm6 = vcmp.gt.f32.partialorder %v340_v34, 0.0  ;;  %v346_v41 = vmul.f32 0.2, %v340_v34 }
 0x2b5   :  { %vm343_vm7 = vcmp.gt.f32.partialorder %v335_v37, 0.0  ;;  %v345_v44 = vmul.f32 0.2, %v335_v37 }
 0x2b6   :  { %v348_v46 = vsel %vm344_vm6, %v340_v34, %v346_v41 }
 0x2b7   :  { %v347_v48 = vsel %vm343_vm7, %v335_v37, %v345_v44 }
 0x2b8   :  { %v959_v49 = vpack.c.bf16 %v348_v46, %v347_v48 }
 0x2ba   :  { %960 = vmatprep.subr.bf16.mxu1 %v959_v49 }
 0x2bb   :  { %962 = vmatpush3.bf16.msra.mxu1 %v959_v49 }
 0x2bc   :  { %972 = vmatprep.subr.bf16.mxu1 %v971_v53 }
 0x2be   :  { %895 = vmatmul.mubr.msk.f32.vlgmr.msra.gmra.mrb[2].mxu1 %vm62_vm1, %v1183_v10  ;;  %v983_v10 = vpack.c.bf16 %v703_v8, %v702_v7 }
 0x2bf   :  { %974 = vmatpush3.bf16.msra.mxu1 %v971_v53 }
 0x2c0   :  { %976 = vmatprep.subr.bf16.mxu1 %v975_v57 }
 0x2c3   :  { %978 = vmatpush3.bf16.msra.mxu1 %v975_v57 }
 0x2c4   :  { %982 = vmatprep.subr.bf16.mxu1 %v1108_v5 }
 0x391   :  { %v896_v58 = vpop.f32.mrb[2].mxu1 }
 0x392   :  { %v415_v59 = vpop.f32.mrb[3].mxu1 }
 0x393   :  { %905 = vmatprep.mubr.msk.f32.mxu0 %vm155_vm3, %v415_v59 }
 0x394   :  { %906 = vmatmul.mubr.msk.f32.vlgmr.msra.gmra.mrb[4].mxu0 %vm155_vm3, %v896_v58 }
 0x395   :  { %923 = vmatprep.mubr.msk.f32.mxu0 %vm1109_vm10, %v1110_v6 }
 0x467   :  { %v907_v61 = vpop.f32.mrb[4].mxu0 }
 0x468   :  { %v517_v62 = vadd.f32 %v907_v61, %v437_v60  ;;  %v511_v63 = vpop.f32.mrb[5].mxu0 }
 0x469   :  { %v512_v0 = vadd.f32 %v511_v63, %v437_v60 }
 0x46a   :  { %v523_v1 = vmul.f32 0.2, %v517_v62  ;;  %vm521_vm8 = vcmp.gt.f32.partialorder %v517_v62, 0.0 }
 0x46b   :  { %vm520_vm9 = vcmp.gt.f32.partialorder %v512_v0, 0.0  ;;  %v522_v2 = vmul.f32 0.2, %v512_v0 }
 0x46c   :  { %v525_v4 = vsel %vm521_vm8, %v517_v62, %v523_v1 }
 0x46d   :  { %v524_v3 = vsel %vm520_vm9, %v512_v0, %v522_v2 }
 0x46e   :  { %916 = vmatprep.mubr.msk.f32.mxu1 %vm155_vm3, %v524_v3 }
 0x46f   :  { %917 = vmatmul.mubr.msk.f32.vlgmr.msra.gmra.mrb[4].mxu1 %vm155_vm3, %v525_v4 }
 0x470   :  { %934 = vmatprep.mubr.msk.f32.mxu1 %vm1109_vm10, %v1110_v6  ;;  %984 = vmatpush3.bf16.msra.mxu1 %v983_v10 }
 0x471   :  { %985 = vmatprep.subr.bf16.mxu1 %v1108_v5 }
 0x474   :  { %987 = vmatpush3.bf16.msra.mxu1 %v986_v12 }
 0x542   :  { %v918_v14 = vpop.f32.mrb[4].mxu1 }
 0x543   :  { %v619_v15 = vadd.f32 %v918_v14, %v539_v13  ;;  %v613_v16 = vpop.f32.mrb[5].mxu1 }
 0x544   :  { %v614_v17 = vadd.f32 %v613_v16, %v539_v13 }
 0x545   :  { %vm623_vm11 = vcmp.gt.f32.partialorder %v619_v15, 0.0  ;;  %v625_v18 = vmul.f32 0.2, %v619_v15 }
 0x546   :  { %vm622_vm12 = vcmp.gt.f32.partialorder %v614_v17, 0.0  ;;  %v624_v19 = vmul.f32 0.2, %v614_v17 }
 0x547   :  { %v627_v20 = vsel %vm623_vm11, %v619_v15, %v625_v18 }
 0x548   :  { %v626_v21 = vsel %vm622_vm12, %v614_v17, %v624_v19 }
 0x549   :  { %v980_v22 = vpack.c.bf16 %v627_v20, %v626_v21 }
 0x54b   :  { %981 = vmatpush3.bf16.msra.mxu0 %v980_v22 }
 0x54e   :  { %924 = vmatmul.mubr.msk.f32.vlgmr.msra.gmra.mrb[6].mxu0 %vm62_vm1, %v628_v23 }
 0x621   :  { %v698_v24 = vpop.f32.mrb[6].mxu0 }
 0x622   :  { %v925_v25 = vpop.f32.mrb[7].mxu0  ;;  %935 = vmatmul.mubr.msk.f32.vlgmr.msra.gmra.mrb[6].mxu1 %vm155_vm3, %v698_v24 }
 0x6f5   :  { %v782_v27 = vpop.f32.mrb[6].mxu1 }
 0x6f6   :  { %v783_v28 = vadd.f32 %v819_v26, %v782_v27  ;;  %v936_v29 = vpop.f32.mrb[7].mxu1 }
 0x6f8   :  { %786 = vst [vmem:[#allocation7] sm:$0x3] %v783_v28 }
 0x6f9   :  { %1084 = shalt.err (!%p1081_p6)
}
 0x6fa   :  { %s1085_s24 = scalar_lea.hbm %s1250_s7, 32 }
 0x6fb   :  { %p1086_p7 = scmp.ne.s32.totalorder %s1250_s7, %s1085_s24  ;;  %p1089_p8 = scmp.lt.u32.totalorder %s1085_s24, %s1250_s7 }
 0x6fd   :  { %p1091_p9 = pnand %p1089_p8, %p1086_p7 }
 0x6ff   :  { %1094 = shalt.err (!%p1091_p9)
}
 0x700   :  { %796 = dma.vmem_to_hbm [thread:$0]  %s794_s21, 32, %s1250_s7, [#allocation4]  }
 0x701   :  { %1099 = dma.done.wait [#allocation4], 32  }
 0x702   :  { %1100 = vsyncadd [#allocation4], 4294967264 }
 0x703   :  { %800 = vsyncpa [#allocation3], 1 }
 0x704   :  { %801 = vsyncpa [#allocation6], 1 }
 0x705   :  { %802 = vsyncpa [#allocation4], 1 }

</bundles_post_ra>
